<compile_context>
chip_gen: v7x
topology: tpu7x:2x2x1
jax: 0.10.0
libtpu: 0.0.40
codegen_flags: <defaults>
</compile_context>

<pallas_src>
import jax
import jax.numpy as jnp
from jax.experimental import pallas as pl
from jax.experimental.pallas import tpu as pltpu

LANE = 128   # lane width: hidden / output feature dims padded to this
TB = 128     # batch rows per grid step (multiple of 8 sublanes)


def mlp_kernel(x_ref, w1_ref, b1_ref, w2_ref, b2_ref, w3_ref, b3_ref, o_ref):
    x = x_ref[...]                                                   # (TB, k_pad)

    # layer 1: Linear + Tanh  (padded input lanes x padded weight rows -> 0)
    h1 = jnp.tanh(
        jnp.dot(x, w1_ref[...], preferred_element_type=jnp.float32) + b1_ref[...])

    # layer 2: Linear + Tanh  (padded cols stay 0: 0-weights, 0-bias, tanh(0)=0)
    h2 = jnp.tanh(
        jnp.dot(h1, w2_ref[...], preferred_element_type=jnp.float32) + b2_ref[...])

    # layer 3: Linear (no activation)
    y = jnp.dot(h2, w3_ref[...], preferred_element_type=jnp.float32) + b3_ref[...]
    o_ref[...] = y.astype(o_ref.dtype)                               # (TB, 128)


def _pad2(a, rows, cols):
    return jnp.pad(a, ((0, rows - a.shape[0]), (0, cols - a.shape[1])))


def mlp_forward(x, params, *, tb=TB):
    """x: (B, x_vec_size) float32.  params: [(W(in,out), b(1,out)) * 3]."""
    (w1, b1), (w2, b2), (w3, b3) = params
    B, d_in = x.shape
    d_out = w3.shape[1]

    # Batch padded to a multiple of the tile (no-op when already aligned);
    # input feature dim padded only to the next multiple of 8 sublane-words.
    b_pad = ((B + tb - 1) // tb) * tb
    k_pad = ((d_in + 7) // 8) * 8
    xp = x
    if b_pad != B or k_pad != d_in:
        xp = jnp.pad(x, ((0, b_pad - B), (0, k_pad - d_in)))

    # Zero-pad weights/biases once: layer-1 rows to k_pad, all out dims to LANE.
    w1p, b1p = _pad2(w1, k_pad, LANE), _pad2(b1, 1, LANE)
    w2p, b2p = _pad2(w2, LANE, LANE), _pad2(b2, 1, LANE)
    w3p, b3p = _pad2(w3, LANE, LANE), _pad2(b3, 1, LANE)

    # Same block for every grid step -> DMA'd once, stays resident in VMEM.
    resident = lambda a: pl.BlockSpec(a.shape, lambda i: (0, 0))

    out_padded = pl.pallas_call(
        mlp_kernel,
        out_shape=jax.ShapeDtypeStruct((b_pad, LANE), jnp.float32),
        grid=(b_pad // tb,),
        in_specs=[
            pl.BlockSpec((tb, k_pad), lambda i: (i, 0)),   # x streams per step (narrow)
            resident(w1p), resident(b1p),
            resident(w2p), resident(b2p),
            resident(w3p), resident(b3p),
        ],
        out_specs=pl.BlockSpec((tb, LANE), lambda i: (i, 0)),
        compiler_params=pltpu.CompilerParams(
            dimension_semantics=("parallel",)),
    )(xp, w1p, b1p, w2p, b2p, w3p, b3p)

    return out_padded[:B, :d_out]


def init_params(key, x_vec_size=5, y_vec_size=4, layers=(20, 20)):
    """Deterministic init mimicking torch.nn.Linear's U(-1/sqrt(in), 1/sqrt(in))."""
    dims = [x_vec_size, *layers, y_vec_size]
    params = []
    for i in range(len(dims) - 1):
        fan_in, fan_out = dims[i], dims[i + 1]
        key, kw, kb = jax.random.split(key, 3)
        bound = 1.0 / jnp.sqrt(fan_in)
        # stored as (in, out) — transposed relative to PyTorch's (out, in)
        w = jax.random.uniform(kw, (fan_in, fan_out), jnp.float32, -bound, bound)
        b = jax.random.uniform(kb, (1, fan_out), jnp.float32, -bound, bound)
        params.append((w, b))
    return params


def mlp_reference(x, params):
    (w1, b1), (w2, b2), (w3, b3) = params
    h = jnp.tanh(x @ w1 + b1)
    h = jnp.tanh(h @ w2 + b2)
    return h @ w3 + b3


if __name__ == "__main__":
    key = jax.random.PRNGKey(0)
    kx, kp = jax.random.split(key)

    batch, x_vec_size, y_vec_size = 256, 5, 4   # 2 grid steps of TB=128 rows
    x = jax.random.normal(kx, (batch, x_vec_size), jnp.float32)
    params = init_params(kp, x_vec_size=x_vec_size, y_vec_size=y_vec_size,
                         layers=(20, 20))

    y = mlp_forward(x, params)
    jax.block_until_ready(y)

    y_ref = mlp_reference(x, params)
    assert y.shape == (batch, y_vec_size)
    assert jnp.allclose(y, y_ref, atol=1e-5, rtol=1e-5)

    print("KERNEL_OK")
</pallas_src>

<mosaic_0001>
module attributes {stable_mosaic.version = 11 : i64} {
  func.func @mlp_kernel(%arg0: i32, %arg1: memref<128x8xf32, #tpu.memory_space<vmem>>, %arg2: memref<8x128xf32, #tpu.memory_space<vmem>>, %arg3: memref<1x128xf32, #tpu.memory_space<vmem>>, %arg4: memref<128x128xf32, #tpu.memory_space<vmem>>, %arg5: memref<1x128xf32, #tpu.memory_space<vmem>>, %arg6: memref<128x128xf32, #tpu.memory_space<vmem>>, %arg7: memref<1x128xf32, #tpu.memory_space<vmem>>, %arg8: memref<128x128xf32, #tpu.memory_space<vmem>>) attributes {dimension_semantics = [#tpu.dimension_semantics<parallel>], iteration_bounds = array<i64: 2>, scalar_prefetch = 0 : i64, scratch_operands = 0 : i64, tpu.core_type = #tpu.core_type<tc>, window_params = [{transform_indices = @transform_0, window_bounds = array<i64: 128, 8>}, {pipeline_mode = #tpu.pipeline_mode<synchronous>, transform_indices = @transform_1, window_bounds = array<i64: 8, 128>}, {pipeline_mode = #tpu.pipeline_mode<synchronous>, transform_indices = @transform_2, window_bounds = array<i64: 1, 128>}, {pipeline_mode = #tpu.pipeline_mode<synchronous>, transform_indices = @transform_3, window_bounds = array<i64: 128, 128>}, {pipeline_mode = #tpu.pipeline_mode<synchronous>, transform_indices = @transform_4, window_bounds = array<i64: 1, 128>}, {pipeline_mode = #tpu.pipeline_mode<synchronous>, transform_indices = @transform_5, window_bounds = array<i64: 128, 128>}, {pipeline_mode = #tpu.pipeline_mode<synchronous>, transform_indices = @transform_6, window_bounds = array<i64: 1, 128>}, {transform_indices = @transform_7, window_bounds = array<i64: 128, 128>}]} {
    %c0 = arith.constant 0 : index
    %c0_0 = arith.constant 0 : index
    %0 = vector.load %arg1[%c0, %c0_0] : memref<128x8xf32, #tpu.memory_space<vmem>>, vector<128x8xf32>
    %c0_1 = arith.constant 0 : index
    %c0_2 = arith.constant 0 : index
    %1 = vector.load %arg2[%c0_1, %c0_2] : memref<8x128xf32, #tpu.memory_space<vmem>>, vector<8x128xf32>
    %cst = arith.constant dense<0.000000e+00> : vector<128x128xf32>
    %2 = tpu.matmul %0, %1, %cst {dimension_numbers = #tpu.dot_dimension_numbers<[1], [0], [0], [1], [0, 0, 1, 1], [], []>} : vector<128x8xf32>, vector<8x128xf32>, vector<128x128xf32> -> vector<128x128xf32>
    %c0_3 = arith.constant 0 : index
    %c0_4 = arith.constant 0 : index
    %3 = vector.load %arg3[%c0_3, %c0_4] : memref<1x128xf32, #tpu.memory_space<vmem>>, vector<1x128xf32>
    %4 = vector.broadcast %3 : vector<1x128xf32> to vector<128x128xf32>
    %5 = arith.addf %2, %4 : vector<128x128xf32>
    %6 = math.tanh %5 : vector<128x128xf32>
    %c0_5 = arith.constant 0 : index
    %c0_6 = arith.constant 0 : index
    %7 = vector.load %arg4[%c0_5, %c0_6] : memref<128x128xf32, #tpu.memory_space<vmem>>, vector<128x128xf32>
    %cst_7 = arith.constant dense<0.000000e+00> : vector<128x128xf32>
    %8 = tpu.matmul %6, %7, %cst_7 {dimension_numbers = #tpu.dot_dimension_numbers<[1], [0], [0], [1], [0, 0, 1, 1], [], []>} : vector<128x128xf32>, vector<128x128xf32>, vector<128x128xf32> -> vector<128x128xf32>
    %c0_8 = arith.constant 0 : index
    %c0_9 = arith.constant 0 : index
    %9 = vector.load %arg5[%c0_8, %c0_9] : memref<1x128xf32, #tpu.memory_space<vmem>>, vector<1x128xf32>
    %10 = vector.broadcast %9 : vector<1x128xf32> to vector<128x128xf32>
    %11 = arith.addf %8, %10 : vector<128x128xf32>
    %12 = math.tanh %11 : vector<128x128xf32>
    %c0_10 = arith.constant 0 : index
    %c0_11 = arith.constant 0 : index
    %13 = vector.load %arg6[%c0_10, %c0_11] : memref<128x128xf32, #tpu.memory_space<vmem>>, vector<128x128xf32>
    %cst_12 = arith.constant dense<0.000000e+00> : vector<128x128xf32>
    %14 = tpu.matmul %12, %13, %cst_12 {dimension_numbers = #tpu.dot_dimension_numbers<[1], [0], [0], [1], [0, 0, 1, 1], [], []>} : vector<128x128xf32>, vector<128x128xf32>, vector<128x128xf32> -> vector<128x128xf32>
    %c0_13 = arith.constant 0 : index
    %c0_14 = arith.constant 0 : index
    %15 = vector.load %arg7[%c0_13, %c0_14] : memref<1x128xf32, #tpu.memory_space<vmem>>, vector<1x128xf32>
    %16 = vector.broadcast %15 : vector<1x128xf32> to vector<128x128xf32>
    %17 = arith.addf %14, %16 : vector<128x128xf32>
    %c0_15 = arith.constant 0 : index
    %c0_16 = arith.constant 0 : index
    %18 = vector.load %arg8[%c0_15, %c0_16] : memref<128x128xf32, #tpu.memory_space<vmem>>, vector<128x128xf32>
    tpu.vector_store %arg8[%c0_15, %c0_16], %17 {strides = array<i32>} : memref<128x128xf32, #tpu.memory_space<vmem>>, vector<128x128xf32>,
    return
  }
  func.func @transform_0(%arg0: i32) -> (i32, i32) {
    %c0_i32 = arith.constant 0 : i32
    %c0_i32_0 = arith.constant 0 : i32
    return %arg0, %c0_i32 : i32, i32
  }
  func.func @transform_1(%arg0: i32) -> (i32, i32) {
    %c0_i32 = arith.constant 0 : i32
    %c0_i32_0 = arith.constant 0 : i32
    %c0_i32_1 = arith.constant 0 : i32
    return %c0_i32, %c0_i32_0 : i32, i32
  }
  func.func @transform_2(%arg0: i32) -> (i32, i32) {
    %c0_i32 = arith.constant 0 : i32
    %c0_i32_0 = arith.constant 0 : i32
    %c0_i32_1 = arith.constant 0 : i32
    return %c0_i32, %c0_i32_0 : i32, i32
  }
  func.func @transform_3(%arg0: i32) -> (i32, i32) {
    %c0_i32 = arith.constant 0 : i32
    %c0_i32_0 = arith.constant 0 : i32
    %c0_i32_1 = arith.constant 0 : i32
    return %c0_i32, %c0_i32_0 : i32, i32
  }
  func.func @transform_4(%arg0: i32) -> (i32, i32) {
    %c0_i32 = arith.constant 0 : i32
    %c0_i32_0 = arith.constant 0 : i32
    %c0_i32_1 = arith.constant 0 : i32
    return %c0_i32, %c0_i32_0 : i32, i32
  }
  func.func @transform_5(%arg0: i32) -> (i32, i32) {
    %c0_i32 = arith.constant 0 : i32
    %c0_i32_0 = arith.constant 0 : i32
    %c0_i32_1 = arith.constant 0 : i32
    return %c0_i32, %c0_i32_0 : i32, i32
  }
  func.func @transform_6(%arg0: i32) -> (i32, i32) {
    %c0_i32 = arith.constant 0 : i32
    %c0_i32_0 = arith.constant 0 : i32
    %c0_i32_1 = arith.constant 0 : i32
    return %c0_i32, %c0_i32_0 : i32, i32
  }
  func.func @transform_7(%arg0: i32) -> (i32, i32) {
    %c0_i32 = arith.constant 0 : i32
    %c0_i32_0 = arith.constant 0 : i32
    return %arg0, %c0_i32 : i32, i32
  }
}

</mosaic_0001>

<bundles_post_ra>
// kernel: tpu_custom_call.1
= control target key start
LH: loop header
LB: loop body
LE: loop exit
PB: predicated region body
PF: predicated region fallthrough
CT: control target
= control target key end

     0   :  { %12 = vsyncpa [#allocation3], 0  ;;  %s1788_s0 = inlined_call_operand.vmem [shape: f32[256,8], index: 0, kind: input, shape index: {}]   ;;  %s1789_s1 = inlined_call_operand.vmem [shape: f32[8,128], index: 1, kind: input, shape index: {}]   ;;  %s1790_s2 = inlined_call_operand.vmem [shape: f32[1,128], index: 2, kind: input, shape index: {}]   ;;  %s1791_s3 = inlined_call_operand.vmem [shape: f32[128,128], index: 3, kind: input, shape index: {}]   ;;  %s1792_s4 = inlined_call_operand.vmem [shape: f32[1,128], index: 4, kind: input, shape index: {}]   ;;  %s1793_s5 = inlined_call_operand.vmem [shape: f32[128,128], index: 5, kind: input, shape index: {}]   ;;  %s1794_s6 = inlined_call_operand.vmem [shape: f32[1,128], index: 6, kind: input, shape index: {}]   ;;  %s1795_s7 = inlined_call_operand.hbm [shape: f32[256,128], index: 7, kind: output, shape index: {}]  }
   0x1   :  { %14 = vsyncpa [#allocation3 + $0x1], 0  ;;  %s1485_s24 = smov 0   ;;  %s1487_s25 = smov 0  }
   0x2   :  { %s1489_s26 = smov 0   ;;  %s1491_s27 = smov 0  }
   0x3 LB: > { %s1506_s28 = sadd.s32 4294967295, %s1440_s27   ;;  %s958_s29 = sadd.s32 4294967294, %s1440_s27   ;;  %s1440_s27 = sphi %s1491_s27, %s1801_s27   ;;  %s1436_s26 = sphi %s1489_s26, %s1800_s26   ;;  %s1432_s25 = sphi %s1487_s25, %s1799_s25   ;;  %s1428_s24 = sphi %s1485_s24, %s1798_s24  }
   0x4   : > { %s1510_s30 = sadd.s32 1, %s1440_s27   ;;  %s179_s8 = sadd.s32 1, %s1436_s26 }
   0x5   : > { %s176_s9 = ssub.s32 %s1440_s27, %s1510_s30  ;;  %p189_p0 = scmp.ne.s32.totalorder %s1436_s26, %s1432_s25 }
   0x6   : > { %p177_p1 = scmp.eq.s32.totalorder %s176_s9, 0  ;;  %p190_p2 = scmp.eq.s32.totalorder %s1506_s28, 1 }
   0x7   : > { %p195_p3 = scmp.ne.s32.totalorder %s1432_s25, %s1428_s24  ;;  %p196_p4 = scmp.eq.s32.totalorder %s958_s29, 1 }
   0x8   : > { %s1521_s10 = scalar_select %p177_p1, %s1436_s26, %s179_s8  }
   0x9   : > { %p1523_p5 = por %p190_p2, %p189_p0  ;;  %p1527_p6 = por %p196_p4, %p195_p3 }
   0xa   : > { %p961_p7 = scmp.ge.s32.totalorder %s1440_s27, 1  ;;  %p241_p8 = scmp.lt.s32.totalorder %s1440_s27, 3 }
   0xc   : > { %p242_p9 = pnand %p961_p7, %p241_p8 }
   0xd   : > { %v296_v0 = vld [vmem:[%s1789_s1] sm:$0xff] (!%p242_p9)  ;;  %s963_s15 = sshll.u32 (!%p242_p9), %s1506_s28, 4  ;;  %v515_v2 = vld [vmem:[%s1791_s3 + $0x8] sm:$0xff] (!%p242_p9)  ;;  %v516_v4 = vld [vmem:[%s1791_s3 + $0x10] sm:$0xff] (!%p242_p9)  ;;  %vm304_vm0 = vcmask (!%p242_p9), 64512   ;;  %s270_s19 = sand.u32 (!%p242_p9), 1, %s1432_s25  }
   0xe   : > { %245 = sbr.rel (%p242_p9) target bundleno = 738 (0x2e2), region = 48  ;;  %v514_v1 = vld [vmem:[%s1791_s3] sm:$0xff] (!%p242_p9)  ;;  %1071 = vmatprep.subr.mxu0 (!%p242_p9), %v296_v0  ;;  %p274_p10 = scmp.lt.s32.totalorder (!%p242_p9), %s963_s15, 31  ;;  %v517_v5 = vld [vmem:[%s1791_s3 + $0x18] sm:$0xff] (!%p242_p9)  ;;  %v519_v8 = vld [vmem:[%s1791_s3 + $0x28] sm:$0xff] (!%p242_p9) }
   0xf   : > { %v1209_v3 = vpack.c.bf16 (!%p242_p9), %v515_v2, %v514_v1  ;;  %1072 = vmatpush3.msra.mxu0 (!%p242_p9), %v296_v0  ;;  %v1213_v6 = vpack.c.bf16 (!%p242_p9), %v517_v5, %v516_v4  ;;  %v518_v7 = vld [vmem:[%s1791_s3 + $0x20] sm:$0xff] (!%p242_p9)  ;;  %v520_v10 = vld [vmem:[%s1791_s3 + $0x30] sm:$0xff] (!%p242_p9)  ;;  %v521_v11 = vld [vmem:[%s1791_s3 + $0x38] sm:$0xff] (!%p242_p9)  ;;  %s962_s20 = sshll.u32 (!%p242_p9), %s270_s19, 7  ;;  %s989_s23 = sshll.u32 (!%p242_p9), %s1506_s28, 11 }
  0x10   : > { %v1217_v9 = vpack.c.bf16 (!%p242_p9), %v519_v8, %v518_v7  ;;  %v1221_v15 = vpack.c.bf16 (!%p242_p9), %v521_v11, %v520_v10  ;;  %v522_v29 = vld [vmem:[%s1791_s3 + $0x40] sm:$0xff] (!%p242_p9)  ;;  %v523_v30 = vld [vmem:[%s1791_s3 + $0x48] sm:$0xff] (!%p242_p9)  ;;  %v524_v32 = vld [vmem:[%s1791_s3 + $0x50] sm:$0xff] (!%p242_p9)  ;;  %s1739_s13 = scalar_lea.hbm (!%p242_p9), %s1795_s7, %s989_s23  ;;  %s1747_s28 = scalar_lea.sflag (!%p242_p9), [#allocation3], %s270_s19 }
  0x11   : > { %1210 = vmatprep.subr.bf16.mxu1 (!%p242_p9), %v1209_v3  ;;  %v1225_v31 = vpack.c.bf16 (!%p242_p9), %v523_v30, %v522_v29  ;;  %v525_v33 = vld [vmem:[%s1791_s3 + $0x58] sm:$0xff] (!%p242_p9)  ;;  %v526_v35 = vld [vmem:[%s1791_s3 + $0x60] sm:$0xff] (!%p242_p9)  ;;  %v527_v36 = vld [vmem:[%s1791_s3 + $0x68] sm:$0xff] (!%p242_p9)  ;;  %s1442_s16 = smov (!%p242_p9), [#allocation2]  }
  0x12   : > { %1212 = vmatpush3.bf16.msra.mxu1 (!%p242_p9), %v1209_v3  ;;  %v1229_v34 = vpack.c.bf16 (!%p242_p9), %v525_v33, %v524_v32  ;;  %v1233_v37 = vpack.c.bf16 (!%p242_p9), %v527_v36, %v526_v35  ;;  %v528_v38 = vld [vmem:[%s1791_s3 + $0x70] sm:$0xff] (!%p242_p9)  ;;  %v529_v39 = vld [vmem:[%s1791_s3 + $0x78] sm:$0xff] (!%p242_p9)  ;;  %v698_v41 = vld [vmem:[%s1793_s5] sm:$0xff] (!%p242_p9)  ;;  %s1382_s17 = sshll.u32 (!%p242_p9), %s1442_s16, 4  ;;  %s1383_s17 = int_to_ptr.vmem [resolvable:$false] %s1382_s17 }
  0x13   : > { %1214 = vmatprep.subr.bf16.mxu1 (!%p242_p9), %v1213_v6  ;;  %v1237_v40 = vpack.c.bf16 (!%p242_p9), %v529_v39, %v528_v38  ;;  %v699_v42 = vld [vmem:[%s1793_s5 + $0x8] sm:$0xff] (!%p242_p9)  ;;  %v700_v43 = vld [vmem:[%s1793_s5 + $0x10] sm:$0xff] (!%p242_p9)  ;;  %v701_v45 = vld [vmem:[%s1793_s5 + $0x18] sm:$0xff] (!%p242_p9) }
  0x14   : > { %v1241_v44 = vpack.c.bf16 (!%p242_p9), %v699_v42, %v698_v41  ;;  %v1245_v46 = vpack.c.bf16 (!%p242_p9), %v701_v45, %v700_v43  ;;  %v702_v47 = vld [vmem:[%s1793_s5 + $0x20] sm:$0xff] (!%p242_p9)  ;;  %v703_v48 = vld [vmem:[%s1793_s5 + $0x28] sm:$0xff] (!%p242_p9)  ;;  %v704_v50 = vld [vmem:[%s1793_s5 + $0x30] sm:$0xff] (!%p242_p9) }
  0x15   : > { %s1803_s15 = smov (!%p274_p10, %s963_s15), 31  ;;  %v1249_v49 = vpack.c.bf16 %v703_v48, %v702_v47  ;;  %v705_v51 = vld [vmem:[%s1793_s5 + $0x38] sm:$0xff]  ;;  %v706_v53 = vld [vmem:[%s1793_s5 + $0x40] sm:$0xff]  ;;  %v707_v54 = vld [vmem:[%s1793_s5 + $0x48] sm:$0xff] }
  0x16   : > { %s964_s14 = sshll.u32 %s1803_s15, 3  ;;  %1216 = vmatpush3.bf16.msra.mxu1 %v1213_v6  ;;  %1242 = vmatprep.subr.bf16.mxu0 %v1241_v44  ;;  %v1253_v52 = vpack.c.bf16 %v705_v51, %v704_v50  ;;  %v1257_v55 = vpack.c.bf16 %v707_v54, %v706_v53  ;;  %v1655_v56 = vld [vmem:[%s1790_s2] ss:$0 sm:$0xff]  ;;  %v708_v41 = vld [vmem:[%s1793_s5 + $0x50] sm:$0xff]  ;;  %v709_v42 = vld [vmem:[%s1793_s5 + $0x58] sm:$0xff]  ;;  %s1718_s15 = scalar_lea.vmem [#allocation2], %s962_s20 }
  0x17   : > { %s1558_s18 = scalar_lea.vmem %s1788_s0, %s964_s14  ;;  %1218 = vmatprep.subr.bf16.mxu1 %v1217_v9  ;;  %v1261_v43 = vpack.c.bf16 %v709_v42, %v708_v41  ;;  %v711_v45 = vld [vmem:[%s1793_s5 + $0x68] sm:$0xff]  ;;  %v712_v47 = vld [vmem:[%s1793_s5 + $0x70] sm:$0xff]  ;;  %v713_v48 = vld [vmem:[%s1793_s5 + $0x78] sm:$0xff]  ;;  %s896_s29 = sshll.u32 %s1718_s15, 4  ;;  %s1741_s29 = int_to_ptr.vmem [resolvable:$true] %s896_s29 }
  0x18   : > { %v280_v12 = vld [vmem:[%s1558_s18] sm:$0xff]  ;;  %v281_v13 = vld [vmem:[%s1558_s18 + $0x8] sm:$0xff]  ;;  %v282_v14 = vld [vmem:[%s1558_s18 + $0x10] sm:$0xff]  ;;  %s1378_s14 = scalar_lea.vmem %s1741_s29, 2048  ;;  %p1385_p0 = scmp.lt.s32.totalorder %s1741_s29, %s1383_s17 }
  0x19   : > { %1073 = vmatprep.mubr.msk.f32.mxu0 %vm304_vm0, %v280_v12  ;;  %v283_v16 = vld [vmem:[%s1558_s18 + $0x18] sm:$0xff]  ;;  %v284_v17 = vld [vmem:[%s1558_s18 + $0x20] sm:$0xff]  ;;  %v285_v18 = vld [vmem:[%s1558_s18 + $0x28] sm:$0xff]  ;;  %p1379_p11 = scmp.ne.s32.totalorder %s1741_s29, %s1378_s14 }
  0x1a   : > { %1074 = vmatmul.mubr.msk.f32.vlgmr.msra.gmra.mrb[0].mxu0 %vm304_vm0, %v281_v13  ;;  %1220 = vmatpush3.bf16.msra.mxu1 %v1217_v9  ;;  %v286_v19 = vld [vmem:[%s1558_s18 + $0x30] sm:$0xff]  ;;  %v287_v20 = vld [vmem:[%s1558_s18 + $0x38] sm:$0xff]  ;;  %v288_v21 = vld [vmem:[%s1558_s18 + $0x40] sm:$0xff] }
  0x1b   : > { %1076 = vmatprep.mubr.msk.f32.mxu0 %vm304_vm0, %v282_v14  ;;  %1222 = vmatprep.subr.bf16.mxu1 %v1221_v15  ;;  %v289_v22 = vld [vmem:[%s1558_s18 + $0x48] sm:$0xff]  ;;  %v290_v23 = vld [vmem:[%s1558_s18 + $0x50] sm:$0xff]  ;;  %v291_v24 = vld [vmem:[%s1558_s18 + $0x58] sm:$0xff]  ;;  %p1380_p12 = pnand %p1379_p11, %p1523_p5 }
  0x1c   : > { %v292_v25 = vld [vmem:[%s1558_s18 + $0x60] sm:$0xff]  ;;  %v293_v26 = vld [vmem:[%s1558_s18 + $0x68] sm:$0xff]  ;;  %v294_v27 = vld [vmem:[%s1558_s18 + $0x70] sm:$0xff]  ;;  %1244 = vmatpush3.bf16.msra.mxu0 %v1241_v44 }
  0x1d   : > { %v295_v28 = vld [vmem:[%s1558_s18 + $0x78] sm:$0xff]  ;;  %1246 = vmatprep.subr.bf16.mxu0 %v1245_v46  ;;  %v710_v44 = vld [vmem:[%s1793_s5 + $0x60] sm:$0xff]  ;;  %p1381_p13 = pneg %p1380_p12  ;;  %s1384_s18 = scalar_lea.vmem %s1383_s17, 4096 }
  0x1e   : > { %1077 = vmatmul.mubr.msk.f32.gmra.mrb[2].mxu0 %vm304_vm0, %v283_v16  ;;  %1224 = vmatpush3.bf16.msra.mxu1 %v1221_v15  ;;  %v1694_v50 = vld [vmem:[%s1792_s4] ss:$0 sm:$0xff]  ;;  %p1386_p1 = scmp.lt.s32.totalorder %s1384_s18, %s1378_s14 }
  0x1f   : > { %1079 = vmatprep.mubr.msk.f32.mxu0 %vm304_vm0, %v284_v17  ;;  %1226 = vmatprep.subr.bf16.mxu1 %v1225_v31 }
  0x20   : > { %1248 = vmatpush3.bf16.msra.mxu0 %v1245_v46  ;;  %v1265_v46 = vpack.c.bf16 %v711_v45, %v710_v44  ;;  %p1387_p2 = por %p1386_p1, %p1385_p0 }
  0x21   : > { %1250 = vmatprep.subr.bf16.mxu0 %v1249_v49 }
  0x22   : > { %1080 = vmatmul.mubr.msk.f32.gmra.mrb[4].mxu0 %vm304_vm0, %v285_v18  ;;  %1228 = vmatpush3.bf16.msra.mxu1 %v1225_v31  ;;  %p1388_p3 = pnand %p1387_p2, %p1381_p13 }
  0x23   : > { %1082 = vmatprep.mubr.msk.f32.mxu0 %vm304_vm0, %v286_v19  ;;  %1230 = vmatprep.subr.bf16.mxu1 %v1229_v34 }
  0x24   : > { %1252 = vmatpush3.bf16.msra.mxu0 %v1249_v49  ;;  %v1269_v49 = vpack.c.bf16 %v713_v48, %v712_v47 }
  0x25   : > { %1254 = vmatprep.subr.bf16.mxu0 %v1253_v52 }
  0x26   : > { %1083 = vmatmul.mubr.msk.f32.gmra.mrb[6].mxu0 %vm304_vm0, %v287_v20  ;;  %1232 = vmatpush3.bf16.msra.mxu1 %v1229_v34 }
  0x27   : > { %1085 = vmatprep.mubr.msk.f32.mxu0 %vm304_vm0, %v288_v21  ;;  %1234 = vmatprep.subr.bf16.mxu1 %v1233_v37 }
  0x28   : > { %1256 = vmatpush3.bf16.msra.mxu0 %v1253_v52 }
  0x29   : > { %1258 = vmatprep.subr.bf16.mxu0 %v1257_v55 }
  0x2a   : > { %1086 = vmatmul.mubr.msk.f32.gmra.mrb[8].mxu0 %vm304_vm0, %v289_v22  ;;  %1236 = vmatpush3.bf16.msra.mxu1 %v1233_v37 }
  0x2b   : > { %1088 = vmatprep.mubr.msk.f32.mxu0 %vm304_vm0, %v290_v23  ;;  %1238 = vmatprep.subr.bf16.mxu1 %v1237_v40 }
  0x2c   : > { %1260 = vmatpush3.bf16.msra.mxu0 %v1257_v55 }
  0x2d   : > { %1262 = vmatprep.subr.bf16.mxu0 %v1261_v43 }
  0x2e   : > { %1089 = vmatmul.mubr.msk.f32.gmra.mrb[10].mxu0 %vm304_vm0, %v291_v24  ;;  %1240 = vmatpush3.bf16.msra.mxu1 %v1237_v40 }
  0x2f   : > { %1091 = vmatprep.mubr.msk.f32.mxu0 %vm304_vm0, %v292_v25 }
  0x30   : > { %1264 = vmatpush3.bf16.msra.mxu0 %v1261_v43 }
  0x31   : > { %1266 = vmatprep.subr.bf16.mxu0 %v1265_v46 }
  0x32   : > { %1092 = vmatmul.mubr.msk.f32.gmra.mrb[12].mxu0 %vm304_vm0, %v293_v26 }
  0x33   : > { %1094 = vmatprep.mubr.msk.f32.mxu0 %vm304_vm0, %v294_v27 }
  0x34   : > { %1268 = vmatpush3.bf16.msra.mxu0 %v1265_v46 }
  0x35   : > { %1270 = vmatprep.subr.bf16.mxu0 %v1269_v49 }
  0x36   : > { %1095 = vmatmul.mubr.msk.f32.gmra.mrb[14].mxu0 %vm304_vm0, %v295_v28 }
  0x38   : > { %1272 = vmatpush3.bf16.msra.mxu0 %v1269_v49 }
  0xed   : > { %v1075_v57 = vpop.f32.mrb[0].mxu0 }
  0xee   : > { %v425_v58 = vadd.f32 %v1075_v57, %v1655_v56  ;;  %v419_v59 = vpop.f32.mrb[1].mxu0 }
  0xef   : > { %v420_v60 = vadd.f32 %v1655_v56, %v419_v59 }
  0xf1   : > { %1314 = vtanh.f32 %v420_v60  ;;  %v1078_v61 = vpop.f32.mrb[2].mxu0 }
  0xf2   : > { %1316 = vtanh.f32 %v425_v58  ;;  %v435_v62 = vadd.f32 %v1078_v61, %v1655_v56  ;;  %v429_v63 = vpop.f32.mrb[3].mxu0 }
  0xf3   : > { %v430_v0 = vadd.f32 %v1655_v56, %v429_v63 }
  0xf5   : > { %1318 = vtanh.f32 %v430_v0  ;;  %v1081_v1 = vpop.f32.mrb[4].mxu0 }
  0xf6   : > { %1320 = vtanh.f32 %v435_v62  ;;  %v445_v2 = vadd.f32 %v1081_v1, %v1655_v56  ;;  %v439_v3 = vpop.f32.mrb[5].mxu0 }
  0xf7   : > { %v440_v4 = vadd.f32 %v1655_v56, %v439_v3 }
  0xf9   : > { %1322 = vtanh.f32 %v440_v4  ;;  %v1084_v5 = vpop.f32.mrb[6].mxu0 }
  0xfa   : > { %1324 = vtanh.f32 %v445_v2  ;;  %v455_v6 = vadd.f32 %v1084_v5, %v1655_v56  ;;  %v449_v7 = vpop.f32.mrb[7].mxu0 }
  0xfb   : > { %v1315_v8 = vpop.eup %1314  ;;  %v450_v9 = vadd.f32 %v1655_v56, %v449_v7 }
  0xfc   : > { %v1317_v10 = vpop.eup %1316  ;;  %1129 = vmatprep.mubr.f32.mxu1 %v1315_v8 }
  0xfd   : > { %1326 = vtanh.f32 %v450_v9  ;;  %v1087_v11 = vpop.f32.mrb[8].mxu0  ;;  %1130 = vmatmul.mubr.f32.vlgmr.msra.gmra.mrb[0].mxu1 %v1317_v10 }
  0xfe   : > { %1328 = vtanh.f32 %v455_v6  ;;  %v465_v12 = vadd.f32 %v1087_v11, %v1655_v56  ;;  %v459_v13 = vpop.f32.mrb[9].mxu0 }
  0xff   : > { %v1319_v14 = vpop.eup %1318  ;;  %v460_v15 = vadd.f32 %v1655_v56, %v459_v13 }
 0x100   : > { %v1321_v16 = vpop.eup %1320  ;;  %1132 = vmatprep.mubr.f32.mxu1 %v1319_v14 }
 0x101   : > { %1330 = vtanh.f32 %v460_v15  ;;  %v1090_v17 = vpop.f32.mrb[10].mxu0  ;;  %1133 = vmatmul.mubr.f32.gmra.mrb[2].mxu1 %v1321_v16 }
 0x102   : > { %1332 = vtanh.f32 %v465_v12  ;;  %v475_v18 = vadd.f32 %v1090_v17, %v1655_v56  ;;  %v469_v19 = vpop.f32.mrb[11].mxu0 }
 0x103   : > { %v1323_v20 = vpop.eup %1322  ;;  %v470_v21 = vadd.f32 %v1655_v56, %v469_v19 }
 0x104   : > { %v1325_v22 = vpop.eup %1324  ;;  %1135 = vmatprep.mubr.f32.mxu1 %v1323_v20 }
 0x105   : > { %1334 = vtanh.f32 %v470_v21  ;;  %v1093_v23 = vpop.f32.mrb[12].mxu0  ;;  %1136 = vmatmul.mubr.f32.gmra.mrb[4].mxu1 %v1325_v22 }
 0x106   : > { %1336 = vtanh.f32 %v475_v18  ;;  %v485_v24 = vadd.f32 %v1093_v23, %v1655_v56  ;;  %v479_v25 = vpop.f32.mrb[13].mxu0 }
 0x107   : > { %v1327_v26 = vpop.eup %1326  ;;  %v480_v27 = vadd.f32 %v1655_v56, %v479_v25 }
 0x108   : > { %v1329_v28 = vpop.eup %1328  ;;  %1138 = vmatprep.mubr.f32.mxu1 %v1327_v26 }
 0x109   : > { %1338 = vtanh.f32 %v480_v27  ;;  %v1096_v29 = vpop.f32.mrb[14].mxu0  ;;  %1139 = vmatmul.mubr.f32.gmra.mrb[6].mxu1 %v1329_v28 }
 0x10a   : > { %1340 = vtanh.f32 %v485_v24  ;;  %v495_v30 = vadd.f32 %v1096_v29, %v1655_v56  ;;  %v489_v31 = vpop.f32.mrb[15].mxu0 }
 0x10b   : > { %v1331_v32 = vpop.eup %1330  ;;  %v490_v33 = vadd.f32 %v1655_v56, %v489_v31 }
 0x10c   : > { %v1333_v34 = vpop.eup %1332  ;;  %1141 = vmatprep.mubr.f32.mxu1 %v1331_v32 }
 0x10d   : > { %1342 = vtanh.f32 %v490_v33  ;;  %1142 = vmatmul.mubr.f32.gmra.mrb[8].mxu1 %v1333_v34 }
 0x10e   : > { %1344 = vtanh.f32 %v495_v30 }
 0x10f   : > { %v1335_v35 = vpop.eup %1334 }
 0x110   : > { %v1337_v36 = vpop.eup %1336  ;;  %1144 = vmatprep.mubr.f32.mxu1 %v1335_v35  ;;  %v983_v35 = vld [vmem:[%s1794_s6] ss:$0 sm:$0xff] }
 0x111   : > { %1145 = vmatmul.mubr.f32.gmra.mrb[10].mxu1 %v1337_v36 }
 0x113   : > { %v1339_v37 = vpop.eup %1338 }
 0x114   : > { %v1341_v38 = vpop.eup %1340  ;;  %1147 = vmatprep.mubr.f32.mxu1 %v1339_v37 }
 0x115   : > { %1148 = vmatmul.mubr.f32.gmra.mrb[12].mxu1 %v1341_v38 }
 0x117   : > { %v1343_v39 = vpop.eup %1342 }
 0x118   : > { %v1345_v40 = vpop.eup %1344  ;;  %1150 = vmatprep.mubr.f32.mxu1 %v1343_v39 }
 0x119   : > { %1151 = vmatmul.mubr.f32.gmra.mrb[14].mxu1 %v1345_v40 }
 0x1d0   : > { %v1131_v51 = vpop.f32.mrb[0].mxu1 }
 0x1d1   : > { %v609_v52 = vadd.f32 %v1131_v51, %v1694_v50  ;;  %v603_v53 = vpop.f32.mrb[1].mxu1 }
 0x1d2   : > { %v604_v54 = vadd.f32 %v1694_v50, %v603_v53 }
 0x1d4   : > { %1346 = vtanh.f32 %v604_v54  ;;  %v1134_v55 = vpop.f32.mrb[2].mxu1 }
 0x1d5   : > { %1348 = vtanh.f32 %v609_v52  ;;  %v619_v56 = vadd.f32 %v1134_v55, %v1694_v50  ;;  %v613_v57 = vpop.f32.mrb[3].mxu1 }
 0x1d6   : > { %v614_v58 = vadd.f32 %v1694_v50, %v613_v57 }
 0x1d8   : > { %1350 = vtanh.f32 %v614_v58  ;;  %v1137_v59 = vpop.f32.mrb[4].mxu1 }
 0x1d9   : > { %1352 = vtanh.f32 %v619_v56  ;;  %v629_v60 = vadd.f32 %v1137_v59, %v1694_v50  ;;  %v623_v61 = vpop.f32.mrb[5].mxu1 }
 0x1da   : > { %v624_v62 = vadd.f32 %v1694_v50, %v623_v61 }
 0x1dc   : > { %1354 = vtanh.f32 %v624_v62  ;;  %v1140_v63 = vpop.f32.mrb[6].mxu1 }
 0x1dd   : > { %1356 = vtanh.f32 %v629_v60  ;;  %v639_v0 = vadd.f32 %v1140_v63, %v1694_v50  ;;  %v633_v1 = vpop.f32.mrb[7].mxu1 }
 0x1de   : > { %v1347_v2 = vpop.eup %1346  ;;  %v634_v3 = vadd.f32 %v1694_v50, %v633_v1 }
 0x1df   : > { %v1349_v4 = vpop.eup %1348  ;;  %1185 = vmatprep.mubr.f32.mxu0 %v1347_v2 }
 0x1e0   : > { %1358 = vtanh.f32 %v634_v3  ;;  %v1143_v5 = vpop.f32.mrb[8].mxu1  ;;  %1186 = vmatmul.mubr.f32.vlgmr.msra.gmra.mrb[16].mxu0 %v1349_v4 }
 0x1e1   : > { %1360 = vtanh.f32 %v639_v0  ;;  %v649_v6 = vadd.f32 %v1143_v5, %v1694_v50  ;;  %v643_v7 = vpop.f32.mrb[9].mxu1 }
 0x1e2   : > { %v1351_v8 = vpop.eup %1350  ;;  %v644_v9 = vadd.f32 %v1694_v50, %v643_v7 }
 0x1e3   : > { %v1353_v10 = vpop.eup %1352  ;;  %1188 = vmatprep.mubr.f32.mxu0 %v1351_v8 }
 0x1e4   : > { %1362 = vtanh.f32 %v644_v9  ;;  %v1146_v11 = vpop.f32.mrb[10].mxu1  ;;  %1189 = vmatmul.mubr.f32.gmra.mrb[18].mxu0 %v1353_v10 }
 0x1e5   : > { %1364 = vtanh.f32 %v649_v6  ;;  %v659_v12 = vadd.f32 %v1146_v11, %v1694_v50  ;;  %v653_v13 = vpop.f32.mrb[11].mxu1 }
 0x1e6   : > { %v1355_v14 = vpop.eup %1354  ;;  %v654_v15 = vadd.f32 %v1694_v50, %v653_v13 }
 0x1e7   : > { %v1357_v16 = vpop.eup %1356  ;;  %1191 = vmatprep.mubr.f32.mxu0 %v1355_v14 }
 0x1e8   : > { %1366 = vtanh.f32 %v654_v15  ;;  %v1149_v17 = vpop.f32.mrb[12].mxu1  ;;  %1192 = vmatmul.mubr.f32.gmra.mrb[20].mxu0 %v1357_v16 }
 0x1e9   : > { %1368 = vtanh.f32 %v659_v12  ;;  %v669_v18 = vadd.f32 %v1149_v17, %v1694_v50  ;;  %v663_v19 = vpop.f32.mrb[13].mxu1 }
 0x1ea   : > { %v1359_v20 = vpop.eup %1358  ;;  %v664_v21 = vadd.f32 %v1694_v50, %v663_v19 }
 0x1eb   : > { %v1361_v22 = vpop.eup %1360  ;;  %1194 = vmatprep.mubr.f32.mxu0 %v1359_v20 }
 0x1ec   : > { %1370 = vtanh.f32 %v664_v21  ;;  %v1152_v23 = vpop.f32.mrb[14].mxu1  ;;  %1195 = vmatmul.mubr.f32.gmra.mrb[22].mxu0 %v1361_v22 }
 0x1ed   : > { %1372 = vtanh.f32 %v669_v18  ;;  %v679_v24 = vadd.f32 %v1152_v23, %v1694_v50  ;;  %v673_v25 = vpop.f32.mrb[15].mxu1 }
 0x1ee   : > { %v1363_v26 = vpop.eup %1362  ;;  %v674_v27 = vadd.f32 %v1694_v50, %v673_v25 }
 0x1ef   : > { %v1365_v28 = vpop.eup %1364  ;;  %1197 = vmatprep.mubr.f32.mxu0 %v1363_v26 }
 0x1f0   : > { %1374 = vtanh.f32 %v674_v27  ;;  %1198 = vmatmul.mubr.f32.gmra.mrb[24].mxu0 %v1365_v28 }
 0x1f1   : > { %1376 = vtanh.f32 %v679_v24 }
 0x1f2   : > { %v1367_v29 = vpop.eup %1366 }
 0x1f3   : > { %v1369_v30 = vpop.eup %1368  ;;  %1200 = vmatprep.mubr.f32.mxu0 %v1367_v29 }
 0x1f4   : > { %1201 = vmatmul.mubr.f32.gmra.mrb[26].mxu0 %v1369_v30 }
 0x1f6   : > { %v1371_v31 = vpop.eup %1370 }
 0x1f7   : > { %v1373_v32 = vpop.eup %1372  ;;  %1203 = vmatprep.mubr.f32.mxu0 %v1371_v31 }
 0x1f8   : > { %1204 = vmatmul.mubr.f32.gmra.mrb[28].mxu0 %v1373_v32 }
 0x1fa   : > { %v1375_v33 = vpop.eup %1374 }
 0x1fb   : > { %v1377_v34 = vpop.eup %1376  ;;  %1206 = vmatprep.mubr.f32.mxu0 %v1375_v33 }
 0x1fc   : > { %1207 = vmatmul.mubr.f32.gmra.mrb[30].mxu0 %v1377_v34 }
 0x2b3   : > { %v1187_v36 = vpop.f32.mrb[16].mxu0 }
 0x2b4   : > { %v793_v37 = vadd.f32 %v1187_v36, %v983_v35  ;;  %v787_v38 = vpop.f32.mrb[17].mxu0 }
 0x2b5   : > { %v788_v39 = vadd.f32 %v983_v35, %v787_v38 }
 0x2b6   : > { %867 = vst [vmem:[%s1718_s15 + $0x8] sm:$0xff] %v793_v37 }
 0x2b7   : > { %866 = vst [vmem:[%s1718_s15] sm:$0xff] %v788_v39  ;;  %v1190_v40 = vpop.f32.mrb[18].mxu0 }
 0x2b8   : > { %v803_v41 = vadd.f32 %v1190_v40, %v983_v35  ;;  %v797_v42 = vpop.f32.mrb[19].mxu0 }
 0x2b9   : > { %v798_v43 = vadd.f32 %v983_v35, %v797_v42 }
 0x2ba   : > { %869 = vst [vmem:[%s1718_s15 + $0x18] sm:$0xff] %v803_v41 }
 0x2bb   : > { %868 = vst [vmem:[%s1718_s15 + $0x10] sm:$0xff] %v798_v43  ;;  %v1193_v44 = vpop.f32.mrb[20].mxu0 }
 0x2bc   : > { %v813_v45 = vadd.f32 %v1193_v44, %v983_v35  ;;  %v807_v46 = vpop.f32.mrb[21].mxu0 }
 0x2bd   : > { %v808_v47 = vadd.f32 %v983_v35, %v807_v46 }
 0x2be   : > { %871 = vst [vmem:[%s1718_s15 + $0x28] sm:$0xff] %v813_v45 }
 0x2bf   : > { %870 = vst [vmem:[%s1718_s15 + $0x20] sm:$0xff] %v808_v47  ;;  %v1196_v48 = vpop.f32.mrb[22].mxu0 }
 0x2c0   : > { %v823_v49 = vadd.f32 %v1196_v48, %v983_v35  ;;  %v817_v50 = vpop.f32.mrb[23].mxu0 }
 0x2c1   : > { %v818_v51 = vadd.f32 %v983_v35, %v817_v50 }
 0x2c2   : > { %873 = vst [vmem:[%s1718_s15 + $0x38] sm:$0xff] %v823_v49 }
 0x2c3   : > { %872 = vst [vmem:[%s1718_s15 + $0x30] sm:$0xff] %v818_v51  ;;  %v1199_v52 = vpop.f32.mrb[24].mxu0 }
 0x2c4   : > { %v833_v53 = vadd.f32 %v1199_v52, %v983_v35  ;;  %v827_v54 = vpop.f32.mrb[25].mxu0 }
 0x2c5   : > { %v828_v55 = vadd.f32 %v983_v35, %v827_v54 }
 0x2c6   : > { %875 = vst [vmem:[%s1718_s15 + $0x48] sm:$0xff] %v833_v53 }
 0x2c7   : > { %874 = vst [vmem:[%s1718_s15 + $0x40] sm:$0xff] %v828_v55  ;;  %v1202_v56 = vpop.f32.mrb[26].mxu0 }
 0x2c8   : > { %v843_v57 = vadd.f32 %v1202_v56, %v983_v35  ;;  %v837_v58 = vpop.f32.mrb[27].mxu0 }
 0x2c9   : > { %v838_v59 = vadd.f32 %v983_v35, %v837_v58 }
 0x2ca   : > { %877 = vst [vmem:[%s1718_s15 + $0x58] sm:$0xff] %v843_v57 }
 0x2cb   : > { %876 = vst [vmem:[%s1718_s15 + $0x50] sm:$0xff] %v838_v59  ;;  %v1205_v60 = vpop.f32.mrb[28].mxu0 }
 0x2cc   : > { %v853_v61 = vadd.f32 %v1205_v60, %v983_v35  ;;  %v847_v62 = vpop.f32.mrb[29].mxu0 }
 0x2cd   : > { %v848_v63 = vadd.f32 %v983_v35, %v847_v62 }
 0x2ce   : > { %879 = vst [vmem:[%s1718_s15 + $0x68] sm:$0xff] %v853_v61 }
 0x2cf   : > { %878 = vst [vmem:[%s1718_s15 + $0x60] sm:$0xff] %v848_v63  ;;  %v1208_v0 = vpop.f32.mrb[30].mxu0 }
 0x2d0   : > { %v863_v1 = vadd.f32 %v1208_v0, %v983_v35  ;;  %v857_v2 = vpop.f32.mrb[31].mxu0 }
 0x2d1   : > { %v858_v3 = vadd.f32 %v983_v35, %v857_v2 }
 0x2d2   : > { %881 = vst [vmem:[%s1718_s15 + $0x78] sm:$0xff] %v863_v1 }
 0x2d3   : > { %880 = vst [vmem:[%s1718_s15 + $0x70] sm:$0xff] %v858_v3 }
 0x2d4   : > { %1391 = shalt.err (!%p1388_p3)
}
 0x2d5   : > { %s1392_s19 = scalar_lea.hbm %s1739_s13, 2048  ;;  %s1396_s22 = scalar_lea.hbm %s1795_s7, 4096 }
 0x2d6   : > { %p1393_p4 = scmp.ne.s32.totalorder %s1739_s13, %s1392_s19  ;;  %p1397_p9 = scmp.lt.u32.totalorder %s1739_s13, %s1795_s7 }
 0x2d7   : > { %p1398_p10 = scmp.lt.u32.totalorder %s1396_s22, %s1392_s19  ;;  %p1400_p12 = scmp.lt.u32.totalorder %s1392_s19, %s1739_s13 }
 0x2d8   : > { %p1394_p7 = pnand %p1393_p4, %p1523_p5 }
 0x2d9   : > { %p1399_p11 = por %p1398_p10, %p1397_p9 }
 0x2da   : > { %p1395_p8 = pneg %p1394_p7 }
 0x2db   : > { %p1401_p13 = por %p1400_p12, %p1399_p11 }
 0x2dd   : > { %p1402_p0 = pnand %p1401_p13, %p1395_p8 }
 0x2df   : > { %1405 = shalt.err (!%p1402_p0)
}
 0x2e0   : > { %s1443_s8 = smov 128   ;;  %s1444_s9 = smov 8  }
 0x2e1   : > { %1273 = dma.vmem_to_hbm [thread:$0]  (%p1523_p5), %s1741_s29, 2048, %s1739_s13, %s1747_s28, %s1443_s8, %s1443_s8, %s1444_s9  }
 0x2e2 PF: > { %p1279_p1 = scmp.ge.s32.totalorder %s1440_s27, 2  ;;  %s911_s14 = sand.u32 1, %s1428_s24  }
 0x2e3   : > { %s912_s16 = scalar_lea.sflag [#allocation3], %s911_s14 }
 0x2e4   : > { %p1276_p2 = pnand %p1279_p1, %p1527_p6 }
 0x2e6   : > { %1423 = dma.done.wait (!%p1276_p2), %s912_s16, 2048  }
 0x2e7   : > { %1425 = vsyncadd (!%p1276_p2), %s912_s16, 4294965248  ;;  %p17_p3 = scmp.ge.s32.totalorder %s1510_s30, 4   ;;  %s1798_s24 = smov %s1432_s25 }
 0x2e8   : > { %s1799_s25 = smov %s1436_s26  ;;  %s1800_s26 = smov %s1521_s10 }
 0x2e9   : > { %s1801_s27 = smov %s1510_s30  ;;  %19 = sbr.rel (!%p17_p3) target bundleno = 3 (0x3), region = 83 }
 0x2f0   :  { %917 = vsyncpa [#allocation3], 1 }
 0x2f1   :  { %919 = vsyncpa [#allocation3 + $0x1], 1 }

</bundles_post_ra>
